<compile_context>
chip_gen: v7x
topology: tpu7x:2x2x1
jax: 0.10.0
libtpu: 0.0.40
codegen_flags: <defaults>
</compile_context>

<pallas_src>
import functools

import jax
import jax.numpy as jnp
from jax.experimental import pallas as pl
from jax.experimental.pallas import tpu as pltpu

# ----------------------------- config ---------------------------------------
N_NODES = 16        # number of graph nodes
DIM_IN = 8
DIM_HIDDEN = 32
HEADS = 3
NEG_SLOPE_LINEAR = 0.01   # nn.LeakyReLU default
NEG_SLOPE_ATTN = 0.2      # GATConv default
NEG_INF = -1e30


# ----------------------------- kernel ---------------------------------------
def gat_kernel(edge_ref, x_ref, w1_ref, b1_ref, wsrc_ref, vsrc_ref,
               udst_ref, rnode_ref, rhead_ref, bgat_ref, out_ref,
               *, heads, n_nodes):
    n = n_nodes

    # --- densify edge list in-kernel (iota one-hots + one MXU dot) ---
    ei = edge_ref[...]                                            # [2, E] int32
    n_edges = ei.shape[1]
    node_ids = jax.lax.broadcasted_iota(jnp.int32, (n, n_edges), 0)
    oh_src = (node_ids == ei[0:1, :]).astype(jnp.float32)         # [N, E]
    oh_dst = (node_ids == ei[1:2, :]).astype(jnp.float32)         # [N, E]
    # adj[i, j] = number of edges j -> i   (multigraph-correct, runs on MXU)
    adj = jax.lax.dot_general(oh_dst, oh_src, (((1,), (1,)), ((), ())),
                              preferred_element_type=jnp.float32)  # [N, N]

    # --- linearSeq: Linear + LeakyReLU(0.01) ---
    h = jnp.dot(x_ref[...], w1_ref[...],
                preferred_element_type=jnp.float32) + b1_ref[...]  # [N, C]
    h = jnp.where(h >= 0, h, NEG_SLOPE_LINEAR * h)

    # --- attention logits for ALL heads, head-major sublane layout [H*N, N] ---
    # a_src_rows[h, j] = <h[j], v_src[h]>  (one dot_general, no transposes)
    a_src_rows = jax.lax.dot_general(vsrc_ref[...], h, (((1,), (1,)), ((), ())),
                                     preferred_element_type=jnp.float32)  # [H, N]
    # h_tiled[h*N+i, :] = h[i, :]  via constant node-selector matmul
    h_tiled = jnp.dot(rnode_ref[...], h,
                      preferred_element_type=jnp.float32)          # [H*N, C]
    # a_dst_col[h*N+i] = <h[i], u_dst[h]>  (row-wise reduce, no transpose)
    a_dst_col = jnp.sum(h_tiled * udst_ref[...], axis=-1, keepdims=True)  # [H*N, 1]
    # e[h*N+i, j] = a_dst[i, h] + a_src[j, h]   (head selector matmul + bcast)
    e = a_dst_col + jnp.dot(rhead_ref[...], a_src_rows,
                            preferred_element_type=jnp.float32)    # [H*N, N]
    e = jnp.where(e >= 0, e, NEG_SLOPE_ATTN * e)                   # LeakyReLU(0.2)

    # --- fused softmax over incoming edges (ONE masked max, ONE sum) ---
    adj_tiled = jnp.dot(rnode_ref[...], adj,
                        preferred_element_type=jnp.float32)        # [H*N, N]
    adj_pos = adj_tiled > 0.0
    m = jnp.max(jnp.where(adj_pos, e, NEG_INF), axis=-1, keepdims=True)
    m = jnp.where(m > 0.5 * NEG_INF, m, 0.0)                       # isolated-node guard
    p = jnp.exp(e - m) * adj_tiled                                 # multiplicity-weighted
    denom = jnp.sum(p, axis=-1, keepdims=True)
    denom = jnp.where(denom > 0.0, denom, 1.0)                     # isolated node -> 0 (+bias)
    p = p * pl.reciprocal(denom, approx=True)                      # EUP reciprocal

    # --- messages: three accumulating MXU dots (no concats / lane slicing) ---
    acc = None
    for hh in range(heads):                                        # heads=3, unrolled
        xs_h = jnp.dot(h, wsrc_ref[hh],
                       preferred_element_type=jnp.float32)         # [N, C]
        msg = jnp.dot(p[hh * n:(hh + 1) * n, :], xs_h,
                      preferred_element_type=jnp.float32)          # [N, C]
        acc = msg if acc is None else acc + msg

    # concat=False -> mean over heads, then bias
    out_ref[...] = acc * (1.0 / heads) + bgat_ref[...]


# ----------------------------- wrapper ---------------------------------------
def gat_base_forward(x, edge_index, kp):
    """x: [N, dim_in] f32; edge_index: [2, E] i32 (row 0 = src, row 1 = dst).
    kp: kernel-ready params from prepare_kernel_params (hoisted, one-time)."""
    n = x.shape[0]
    n_edges = edge_index.shape[1]
    heads, c = HEADS, DIM_HIDDEN

    flops = (2 * n * n * n_edges                     # adjacency densify
             + 2 * heads * n * n * n                 # adjacency tile
             + 2 * heads * n * n * c                 # h tile
             + 2 * n * DIM_IN * c                    # linearSeq
             + 2 * heads * n * c                     # a_src logits
             + 4 * heads * n * c                     # a_dst logits
             + 2 * heads * n * heads * n             # e construction
             + 10 * heads * n * n                    # fused softmax elementwise
             + heads * (2 * n * c * c + 2 * n * n * c))  # xs_h + message dots
    cost = pl.CostEstimate(
        flops=flops,
        transcendentals=heads * n * n + heads * n,
        bytes_accessed=4 * (edge_index.size + x.size
                            + sum(int(v.size) for v in kp.values()) + n * c))

    vmem = pl.BlockSpec(memory_space=pltpu.MemorySpace.VMEM)
    kernel = functools.partial(gat_kernel, heads=heads, n_nodes=n)
    out = pl.pallas_call(
        kernel,
        out_shape=jax.ShapeDtypeStruct((n, c), jnp.float32),
        in_specs=[vmem] * 10,
        out_specs=vmem,
        cost_estimate=cost,
    )(edge_index.astype(jnp.int32), x,
      kp["w1"], kp["b1"], kp["wsrc_heads"], kp["v_src"],
      kp["udst_tiled"], kp["rnode"], kp["rhead"], kp["bias_gat"])
    # TODO(synk): GATConv's return_attention_weights companion output is not materialized.
    return out, (None, None)


# ----------------------------- params ---------------------------------------
def init_params(key):
    """Raw parameters in the PyTorch/PyG layout (already transposed for x @ W)."""
    ks = jax.random.split(key, 7)
    scale = 0.1
    return {
        # nn.Linear(dim_in, dim_hidden)
        "w1": scale * jax.random.normal(ks[0], (DIM_IN, DIM_HIDDEN), jnp.float32),
        "b1": scale * jax.random.normal(ks[1], (1, DIM_HIDDEN), jnp.float32),
        # GATConv lin_src / lin_dst: [dim_hidden, heads*dim_hidden]
        "wsrc": scale * jax.random.normal(ks[2], (DIM_HIDDEN, HEADS * DIM_HIDDEN), jnp.float32),
        "wdst": scale * jax.random.normal(ks[3], (DIM_HIDDEN, HEADS * DIM_HIDDEN), jnp.float32),
        # attention vectors: [heads, dim_hidden]
        "att_src": scale * jax.random.normal(ks[4], (HEADS, DIM_HIDDEN), jnp.float32),
        "att_dst": scale * jax.random.normal(ks[5], (HEADS, DIM_HIDDEN), jnp.float32),
        # output bias (concat=False -> [dim_hidden])
        "bias_gat": scale * jax.random.normal(ks[6], (1, DIM_HIDDEN), jnp.float32),
    }


def prepare_kernel_params(raw, n_nodes):
    """One-time (hoisted out of the forward path) derivation of kernel operands."""
    heads, c = HEADS, DIM_HIDDEN
    # per-head source projection weights: [heads, C_in, C_out]
    wsrc_heads = jnp.stack([raw["wsrc"][:, hh * c:(hh + 1) * c] for hh in range(heads)])
    wdst_heads = jnp.stack([raw["wdst"][:, hh * c:(hh + 1) * c] for hh in range(heads)])
    # Fold attention vectors into the projections:
    #   v_src[h] = W_src_h @ a_src_h  ->  alpha_src[j,h] = <h[j], v_src[h]>
    #   u_dst[h] = W_dst_h @ a_dst_h  ->  alpha_dst[i,h] = <h[i], u_dst[h]>
    v_src = jnp.einsum("hio,ho->hi", wsrc_heads, raw["att_src"])          # [H, C]
    u_dst = jnp.einsum("hio,ho->hi", wdst_heads, raw["att_dst"])          # [H, C]
    udst_tiled = jnp.repeat(u_dst, n_nodes, axis=0)                       # [H*N, C]
    # constant selectors (head-major layout builders, consumed by MXU dots)
    rnode = jnp.tile(jnp.eye(n_nodes, dtype=jnp.float32), (heads, 1))     # [H*N, N]
    rhead = jnp.repeat(jnp.eye(heads, dtype=jnp.float32), n_nodes, axis=0)  # [H*N, H]
    return {
        "w1": raw["w1"], "b1": raw["b1"], "bias_gat": raw["bias_gat"],
        "wsrc_heads": wsrc_heads, "v_src": v_src, "udst_tiled": udst_tiled,
        "rnode": rnode, "rhead": rhead,
    }


# ----------------------------- main ------------------------------------------
if __name__ == "__main__":
    key = jax.random.PRNGKey(0)
    k_x, k_p = jax.random.split(key)

    x = jax.random.normal(k_x, (N_NODES, DIM_IN), jnp.float32)

    # Deterministic graph: bidirectional ring -> every node has incoming edges.
    src = jnp.concatenate([jnp.arange(N_NODES), (jnp.arange(N_NODES) + 1) % N_NODES])
    dst = jnp.concatenate([(jnp.arange(N_NODES) + 1) % N_NODES, jnp.arange(N_NODES)])
    edge_index = jnp.stack([src, dst]).astype(jnp.int32)      # [2, 2N]

    raw_params = init_params(k_p)
    # Hoisted one-time prep (NOT on the per-call forward path).
    kparams = prepare_kernel_params(raw_params, N_NODES)
    kparams = {k: jax.block_until_ready(v) for k, v in kparams.items()}

    out, (aw, _) = gat_base_forward(x, edge_index, kparams)
    out = jax.block_until_ready(out)

    assert out.shape == (N_NODES, DIM_HIDDEN)
    assert jnp.all(jnp.isfinite(out))
    print("KERNEL_OK")
</pallas_src>

<mosaic_0001>
module attributes {stable_mosaic.version = 11 : i64} {
  func.func @gat_kernel(%arg0: memref<2x32xi32, #tpu.memory_space<vmem>>, %arg1: memref<16x8xf32, #tpu.memory_space<vmem>>, %arg2: memref<8x32xf32, #tpu.memory_space<vmem>>, %arg3: memref<1x32xf32, #tpu.memory_space<vmem>>, %arg4: memref<3x32x32xf32, #tpu.memory_space<vmem>>, %arg5: memref<3x32xf32, #tpu.memory_space<vmem>>, %arg6: memref<48x32xf32, #tpu.memory_space<vmem>>, %arg7: memref<48x16xf32, #tpu.memory_space<vmem>>, %arg8: memref<48x3xf32, #tpu.memory_space<vmem>>, %arg9: memref<1x32xf32, #tpu.memory_space<vmem>>, %arg10: memref<16x32xf32, #tpu.memory_space<vmem>>) attributes {dimension_semantics = [], scalar_prefetch = 0 : i64, scratch_operands = 0 : i64, tpu.core_type = #tpu.core_type<tc>} {
    %c0 = arith.constant 0 : index
    %c0_0 = arith.constant 0 : index
    %0 = vector.load %arg0[%c0, %c0_0] : memref<2x32xi32, #tpu.memory_space<vmem>>, vector<2x32xi32>
    %1 = tpu.iota {dimensions = array<i32: 0>} : vector<16x32xi32>
    %2 = vector.extract_strided_slice %0 {offsets = [0, 0], sizes = [1, 32], strides = [1, 1]} : vector<2x32xi32> to vector<1x32xi32>
    %3 = vector.broadcast %2 : vector<1x32xi32> to vector<16x32xi32>
    %4 = arith.cmpi eq, %1, %3 : vector<16x32xi32>
    %5 = arith.extui %4 : vector<16x32xi1> to vector<16x32xi32>
    %6 = arith.sitofp %5 : vector<16x32xi32> to vector<16x32xf32>
    %7 = vector.extract_strided_slice %0 {offsets = [1, 0], sizes = [1, 32], strides = [1, 1]} : vector<2x32xi32> to vector<1x32xi32>
    %8 = vector.broadcast %7 : vector<1x32xi32> to vector<16x32xi32>
    %9 = arith.cmpi eq, %1, %8 : vector<16x32xi32>
    %10 = arith.extui %9 : vector<16x32xi1> to vector<16x32xi32>
    %11 = arith.sitofp %10 : vector<16x32xi32> to vector<16x32xf32>
    %cst = arith.constant dense<0.000000e+00> : vector<16x16xf32>
    %12 = tpu.matmul %11, %6, %cst {dimension_numbers = #tpu.dot_dimension_numbers<[1], [1], [0], [0], [0, 0, 1, 0], [], []>} : vector<16x32xf32>, vector<16x32xf32>, vector<16x16xf32> -> vector<16x16xf32>
    %c0_1 = arith.constant 0 : index
    %c0_2 = arith.constant 0 : index
    %13 = vector.load %arg1[%c0_1, %c0_2] : memref<16x8xf32, #tpu.memory_space<vmem>>, vector<16x8xf32>
    %c0_3 = arith.constant 0 : index
    %c0_4 = arith.constant 0 : index
    %14 = vector.load %arg2[%c0_3, %c0_4] : memref<8x32xf32, #tpu.memory_space<vmem>>, vector<8x32xf32>
    %cst_5 = arith.constant dense<0.000000e+00> : vector<16x32xf32>
    %15 = tpu.matmul %13, %14, %cst_5 {dimension_numbers = #tpu.dot_dimension_numbers<[1], [0], [0], [1], [0, 0, 1, 1], [], []>} : vector<16x8xf32>, vector<8x32xf32>, vector<16x32xf32> -> vector<16x32xf32>
    %c0_6 = arith.constant 0 : index
    %c0_7 = arith.constant 0 : index
    %16 = vector.load %arg3[%c0_6, %c0_7] : memref<1x32xf32, #tpu.memory_space<vmem>>, vector<1x32xf32>
    %17 = vector.broadcast %16 : vector<1x32xf32> to vector<16x32xf32>
    %18 = arith.addf %15, %17 : vector<16x32xf32>
    %cst_8 = arith.constant 0.000000e+00 : f32
    %19 = vector.broadcast %cst_8 : f32 to vector<16x32xf32>
    %20 = arith.cmpf oge, %18, %19 : vector<16x32xf32>
    %cst_9 = arith.constant 0.00999999977 : f32
    %21 = vector.broadcast %cst_9 : f32 to vector<16x32xf32>
    %22 = arith.mulf %21, %18 : vector<16x32xf32>
    %23 = arith.select %20, %18, %22 : vector<16x32xi1>, vector<16x32xf32>
    %c0_10 = arith.constant 0 : index
    %c0_11 = arith.constant 0 : index
    %24 = vector.load %arg5[%c0_10, %c0_11] : memref<3x32xf32, #tpu.memory_space<vmem>>, vector<3x32xf32>
    %cst_12 = arith.constant dense<0.000000e+00> : vector<3x16xf32>
    %25 = tpu.matmul %24, %23, %cst_12 {dimension_numbers = #tpu.dot_dimension_numbers<[1], [1], [0], [0], [0, 0, 1, 0], [], []>} : vector<3x32xf32>, vector<16x32xf32>, vector<3x16xf32> -> vector<3x16xf32>
    %c0_13 = arith.constant 0 : index
    %c0_14 = arith.constant 0 : index
    %26 = vector.load %arg7[%c0_13, %c0_14] : memref<48x16xf32, #tpu.memory_space<vmem>>, vector<48x16xf32>
    %cst_15 = arith.constant dense<0.000000e+00> : vector<48x32xf32>
    %27 = tpu.matmul %26, %23, %cst_15 {dimension_numbers = #tpu.dot_dimension_numbers<[1], [0], [0], [1], [0, 0, 1, 1], [], []>} : vector<48x16xf32>, vector<16x32xf32>, vector<48x32xf32> -> vector<48x32xf32>
    %c0_16 = arith.constant 0 : index
    %c0_17 = arith.constant 0 : index
    %28 = vector.load %arg6[%c0_16, %c0_17] : memref<48x32xf32, #tpu.memory_space<vmem>>, vector<48x32xf32>
    %29 = arith.mulf %27, %28 : vector<48x32xf32>
    %cst_18 = arith.constant dense<0.000000e+00> : vector<48xf32>
    %30 = vector.multi_reduction <add>, %29, %cst_18 [1] : vector<48x32xf32> to vector<48xf32>
    %31 = vector.shape_cast %30 : vector<48xf32> to vector<48x1xf32>
    %c0_19 = arith.constant 0 : index
    %c0_20 = arith.constant 0 : index
    %32 = vector.load %arg8[%c0_19, %c0_20] : memref<48x3xf32, #tpu.memory_space<vmem>>, vector<48x3xf32>
    %cst_21 = arith.constant dense<0.000000e+00> : vector<48x16xf32>
    %33 = tpu.matmul %32, %25, %cst_21 {dimension_numbers = #tpu.dot_dimension_numbers<[1], [0], [0], [1], [0, 0, 1, 1], [], []>} : vector<48x3xf32>, vector<3x16xf32>, vector<48x16xf32> -> vector<48x16xf32>
    %34 = vector.broadcast %31 : vector<48x1xf32> to vector<48x16xf32>
    %35 = arith.addf %34, %33 : vector<48x16xf32>
    %cst_22 = arith.constant 0.000000e+00 : f32
    %36 = vector.broadcast %cst_22 : f32 to vector<48x16xf32>
    %37 = arith.cmpf oge, %35, %36 : vector<48x16xf32>
    %cst_23 = arith.constant 2.000000e-01 : f32
    %38 = vector.broadcast %cst_23 : f32 to vector<48x16xf32>
    %39 = arith.mulf %38, %35 : vector<48x16xf32>
    %40 = arith.select %37, %35, %39 : vector<48x16xi1>, vector<48x16xf32>
    %c0_24 = arith.constant 0 : index
    %c0_25 = arith.constant 0 : index
    %41 = vector.load %arg7[%c0_24, %c0_25] : memref<48x16xf32, #tpu.memory_space<vmem>>, vector<48x16xf32>
    %cst_26 = arith.constant dense<0.000000e+00> : vector<48x16xf32>
    %42 = tpu.matmul %41, %12, %cst_26 {dimension_numbers = #tpu.dot_dimension_numbers<[1], [0], [0], [1], [0, 0, 1, 1], [], []>} : vector<48x16xf32>, vector<16x16xf32>, vector<48x16xf32> -> vector<48x16xf32>
    %cst_27 = arith.constant 0.000000e+00 : f32
    %43 = vector.broadcast %cst_27 : f32 to vector<48x16xf32>
    %44 = arith.cmpf ogt, %42, %43 : vector<48x16xf32>
    %cst_28 = arith.constant -1.000000e+30 : f32
    %45 = vector.broadcast %cst_28 : f32 to vector<48x16xf32>
    %46 = arith.select %44, %40, %45 : vector<48x16xi1>, vector<48x16xf32>
    %cst_29 = arith.constant dense<0xFF800000> : vector<48xf32>
    %47 = vector.multi_reduction <maximumf>, %46, %cst_29 [1] : vector<48x16xf32> to vector<48xf32>
    %48 = vector.shape_cast %47 : vector<48xf32> to vector<48x1xf32>
    %cst_30 = arith.constant -5.000000e+29 : f32
    %49 = vector.broadcast %cst_30 : f32 to vector<48x1xf32>
    %50 = arith.cmpf ogt, %48, %49 : vector<48x1xf32>
    %cst_31 = arith.constant 0.000000e+00 : f32
    %51 = vector.broadcast %cst_31 : f32 to vector<48x1xf32>
    %52 = arith.select %50, %48, %51 : vector<48x1xi1>, vector<48x1xf32>
    %53 = vector.broadcast %52 : vector<48x1xf32> to vector<48x16xf32>
    %54 = arith.subf %40, %53 : vector<48x16xf32>
    %55 = math.exp %54 : vector<48x16xf32>
    %56 = arith.mulf %55, %42 : vector<48x16xf32>
    %cst_32 = arith.constant dense<0.000000e+00> : vector<48xf32>
    %57 = vector.multi_reduction <add>, %56, %cst_32 [1] : vector<48x16xf32> to vector<48xf32>
    %58 = vector.shape_cast %57 : vector<48xf32> to vector<48x1xf32>
    %cst_33 = arith.constant 0.000000e+00 : f32
    %59 = vector.broadcast %cst_33 : f32 to vector<48x1xf32>
    %60 = arith.cmpf ogt, %58, %59 : vector<48x1xf32>
    %cst_34 = arith.constant 1.000000e+00 : f32
    %61 = vector.broadcast %cst_34 : f32 to vector<48x1xf32>
    %62 = arith.select %60, %58, %61 : vector<48x1xi1>, vector<48x1xf32>
    %63 = tpu.reciprocal %62 {approx = true} : vector<48x1xf32> -> vector<48x1xf32>
    %64 = vector.broadcast %63 : vector<48x1xf32> to vector<48x16xf32>
    %65 = arith.mulf %56, %64 : vector<48x16xf32>
    %c0_35 = arith.constant 0 : index
    %c0_36 = arith.constant 0 : index
    %c0_37 = arith.constant 0 : index
    %66 = vector.load %arg4[%c0_35, %c0_36, %c0_37] : memref<3x32x32xf32, #tpu.memory_space<vmem>>, vector<1x32x32xf32>
    %67 = vector.shape_cast %66 : vector<1x32x32xf32> to vector<32x32xf32>
    %cst_38 = arith.constant dense<0.000000e+00> : vector<16x32xf32>
    %68 = tpu.matmul %23, %67, %cst_38 {dimension_numbers = #tpu.dot_dimension_numbers<[1], [0], [0], [1], [0, 0, 1, 1], [], []>} : vector<16x32xf32>, vector<32x32xf32>, vector<16x32xf32> -> vector<16x32xf32>
    %69 = vector.extract_strided_slice %65 {offsets = [0, 0], sizes = [16, 16], strides = [1, 1]} : vector<48x16xf32> to vector<16x16xf32>
    %cst_39 = arith.constant dense<0.000000e+00> : vector<16x32xf32>
    %70 = tpu.matmul %69, %68, %cst_39 {dimension_numbers = #tpu.dot_dimension_numbers<[1], [0], [0], [1], [0, 0, 1, 1], [], []>} : vector<16x16xf32>, vector<16x32xf32>, vector<16x32xf32> -> vector<16x32xf32>
    %c1 = arith.constant 1 : index
    %c0_40 = arith.constant 0 : index
    %c0_41 = arith.constant 0 : index
    %71 = vector.load %arg4[%c1, %c0_40, %c0_41] : memref<3x32x32xf32, #tpu.memory_space<vmem>>, vector<1x32x32xf32>
    %72 = vector.shape_cast %71 : vector<1x32x32xf32> to vector<32x32xf32>
    %cst_42 = arith.constant dense<0.000000e+00> : vector<16x32xf32>
    %73 = tpu.matmul %23, %72, %cst_42 {dimension_numbers = #tpu.dot_dimension_numbers<[1], [0], [0], [1], [0, 0, 1, 1], [], []>} : vector<16x32xf32>, vector<32x32xf32>, vector<16x32xf32> -> vector<16x32xf32>
    %74 = vector.extract_strided_slice %65 {offsets = [16, 0], sizes = [16, 16], strides = [1, 1]} : vector<48x16xf32> to vector<16x16xf32>
    %cst_43 = arith.constant dense<0.000000e+00> : vector<16x32xf32>
    %75 = tpu.matmul %74, %73, %cst_43 {dimension_numbers = #tpu.dot_dimension_numbers<[1], [0], [0], [1], [0, 0, 1, 1], [], []>} : vector<16x16xf32>, vector<16x32xf32>, vector<16x32xf32> -> vector<16x32xf32>
    %76 = arith.addf %70, %75 : vector<16x32xf32>
    %c2 = arith.constant 2 : index
    %c0_44 = arith.constant 0 : index
    %c0_45 = arith.constant 0 : index
    %77 = vector.load %arg4[%c2, %c0_44, %c0_45] : memref<3x32x32xf32, #tpu.memory_space<vmem>>, vector<1x32x32xf32>
    %78 = vector.shape_cast %77 : vector<1x32x32xf32> to vector<32x32xf32>
    %cst_46 = arith.constant dense<0.000000e+00> : vector<16x32xf32>
    %79 = tpu.matmul %23, %78, %cst_46 {dimension_numbers = #tpu.dot_dimension_numbers<[1], [0], [0], [1], [0, 0, 1, 1], [], []>} : vector<16x32xf32>, vector<32x32xf32>, vector<16x32xf32> -> vector<16x32xf32>
    %80 = vector.extract_strided_slice %65 {offsets = [32, 0], sizes = [16, 16], strides = [1, 1]} : vector<48x16xf32> to vector<16x16xf32>
    %cst_47 = arith.constant dense<0.000000e+00> : vector<16x32xf32>
    %81 = tpu.matmul %80, %79, %cst_47 {dimension_numbers = #tpu.dot_dimension_numbers<[1], [0], [0], [1], [0, 0, 1, 1], [], []>} : vector<16x16xf32>, vector<16x32xf32>, vector<16x32xf32> -> vector<16x32xf32>
    %82 = arith.addf %76, %81 : vector<16x32xf32>
    %cst_48 = arith.constant 0.333333343 : f32
    %83 = vector.broadcast %cst_48 : f32 to vector<16x32xf32>
    %84 = arith.mulf %82, %83 : vector<16x32xf32>
    %c0_49 = arith.constant 0 : index
    %c0_50 = arith.constant 0 : index
    %85 = vector.load %arg9[%c0_49, %c0_50] : memref<1x32xf32, #tpu.memory_space<vmem>>, vector<1x32xf32>
    %86 = vector.broadcast %85 : vector<1x32xf32> to vector<16x32xf32>
    %87 = arith.addf %84, %86 : vector<16x32xf32>
    %c0_51 = arith.constant 0 : index
    %c0_52 = arith.constant 0 : index
    %88 = vector.load %arg10[%c0_51, %c0_52] : memref<16x32xf32, #tpu.memory_space<vmem>>, vector<16x32xf32>
    tpu.vector_store %arg10[%c0_51, %c0_52], %87 {strides = array<i32>} : memref<16x32xf32, #tpu.memory_space<vmem>>, vector<16x32xf32>,
    return
  }
}

</mosaic_0001>

<bundles_post_ra>
// kernel: tpu_custom_call.1
= control target key start
LH: loop header
LB: loop body
LE: loop exit
PB: predicated region body
PF: predicated region fallthrough
CT: control target
= control target key end

     0   :  { %vm158_vm0 = vcmask 64512   ;;  %v37_v3 = vlaneseq  ;;  %s1984_s0 = inlined_call_operand.vmem [shape: s32[2,32], index: 0, kind: input, shape index: {}]   ;;  %s1985_s1 = inlined_call_operand.vmem [shape: f32[16,8], index: 1, kind: input, shape index: {}]   ;;  %s1986_s2 = inlined_call_operand.vmem [shape: f32[8,32], index: 2, kind: input, shape index: {}]   ;;  %s1987_s3 = inlined_call_operand.vmem [shape: f32[1,32], index: 3, kind: input, shape index: {}]   ;;  %s1988_s4 = inlined_call_operand.vmem [shape: f32[3,32,32], index: 4, kind: input, shape index: {}]   ;;  %s1989_s5 = inlined_call_operand.vmem [shape: f32[3,32], index: 5, kind: input, shape index: {}]   ;;  %s1990_s6 = inlined_call_operand.vmem [shape: f32[48,32], index: 6, kind: input, shape index: {}]   ;;  %s1991_s7 = inlined_call_operand.vmem [shape: f32[48,16], index: 7, kind: input, shape index: {}]   ;;  %s1992_s8 = inlined_call_operand.vmem [shape: f32[48,3], index: 8, kind: input, shape index: {}]   ;;  %s1993_s9 = inlined_call_operand.vmem [shape: f32[1,32], index: 9, kind: input, shape index: {}]   ;;  %s1994_s10 = inlined_call_operand.hbm [shape: f32[16,32], index: 10, kind: output, shape index: {}]  }
   0x1   :  { %v150_v0 = vld [vmem:[%s1986_s2] sm:$0xff]  ;;  %v149_v2 = vld [vmem:[%s1985_s1 + $0x8] sm:$0xff] }
   0x2   :  { %v148_v1 = vld [vmem:[%s1985_s1] sm:$0xff]  ;;  %1464 = vmatprep.subr.mxu1 %v150_v0  ;;  %v38_v4 = vshrl.u32 %v37_v3, 7 }
   0x3   :  { %1466 = vmatprep.mubr.msk.f32.mxu1 %vm158_vm0, %v148_v1  ;;  %1465 = vmatpush3.msra.mxu1 %v150_v0 }
   0x4   :  { %15 = vsyncpa [#allocation3], 0  ;;  %1467 = vmatmul.mubr.msk.f32.vlgmr.msra.gmra.mrb[0].mxu1 %vm158_vm0, %v149_v2  ;;  %v36_v5 = vld [vmem:[%s1984_s0] sm:$0x3]  ;;  %v39_v6 = vadd.s32 8, %v38_v4  ;;  %v42_v7 = vsub.s32 0, %v38_v4 }
   0x5   :  { %vm60_vm1 = vcmask 261120   ;;  %v1679_v9 = vmov 0.0   ;;  %v52_v14 = vsub.s32 1, %v38_v4  ;;  %v1680_v18 = vmov 0.0|0.0   ;;  %v326_v19 = vld [vmem:[%s1991_s7] sm:$0xff]  ;;  %v327_v30 = vld [vmem:[%s1991_s7 + $0x8] sm:$0xff] }
   0x6   :  { %v43_v8 = vrot.slane %v36_v5, %v42_v7  ;;  %vm1754_vm4 = vmpackc.low %vm60_vm1, %vm60_vm1  ;;  %1573 = vmatprep.subr.bf16.mxu1 %v1680_v18  ;;  %vm1681_vm7 = vmmov 0   ;;  %vm332_vm8 = vcmask 130048   ;;  %v1348_v20 = vld [vmem:[%s1987_s3] ss:$0 sm:$0xff]  ;;  %v328_v31 = vld [vmem:[%s1991_s7 + $0x10] sm:$0xff]  ;;  %vm482_vm11 = vcmask 23552  }
   0x7   :  { %v53_v15 = vrot.slane %v36_v5, %v52_v14  ;;  %1473 = vmatprep.mubr.msk.f32.mxu1 %vm1681_vm7, %v1679_v9  ;;  %v246_v32 = vld [vmem:[%s1989_s5] sm:$0x7]  ;;  %v329_v33 = vld [vmem:[%s1991_s7 + $0x18] sm:$0xff]  ;;  %v331_v35 = vld [vmem:[%s1991_s7 + $0x28] sm:$0xff]  ;;  %vm501_vm12 = vcmask 1042432   ;;  %s1682_s28 = smov [#allocation2]  }
   0x8   :  { %vm44_vm2 = vcmp.eq.s32.totalorder %v38_v4, %v43_v8  ;;  %vm45_vm3 = vcmp.eq.s32.totalorder %v39_v6, %v43_v8  ;;  %v330_v34 = vld [vmem:[%s1991_s7 + $0x20] sm:$0xff]  ;;  %v828_v41 = vld [vmem:[%s1988_s4 + $0x8] sm:$0xff]  ;;  %v829_v45 = vld [vmem:[%s1988_s4 + $0x10] sm:$0xff]  ;;  %s1329_s29 = sshll.u32 %s1682_s28, 4  ;;  %s1330_s29 = int_to_ptr.vmem [resolvable:$true] %s1329_s29 }
   0x9   :  { %v1340_v10 = vsel %vm44_vm2, 1.0, %v1679_v9  ;;  %v1341_v11 = vsel %vm45_vm3, 1.0, %v1679_v9  ;;  %vm54_vm5 = vcmp.eq.s32.totalorder %v38_v4, %v53_v15  ;;  %vm55_vm6 = vcmp.eq.s32.totalorder %v39_v6, %v53_v15  ;;  %v476_v39 = vld [vmem:[%s1992_s8] sm:$0xff]  ;;  %v447_v42 = vld [vmem:[%s1990_s6 + $0x8] sm:$0xff]  ;;  %v830_v46 = vld [vmem:[%s1988_s4 + $0x18] sm:$0xff]  ;;  %s1655_s30 = scalar_lea.vmem %s1330_s29, 256  ;;  %p1660_p1 = scmp.lt.s32.totalorder %s1330_s29, %s1330_s29 }
   0xa   :  { %v1567_v13 = vpack.c.bf16 %v1341_v11, %v1340_v10  ;;  %v1342_v16 = vsel %vm54_vm5, 1.0, %v1679_v9  ;;  %v1343_v17 = vsel %vm55_vm6, 1.0, %v1679_v9  ;;  %v827_v40 = vld [vmem:[%s1988_s4] sm:$0xff]  ;;  %v477_v52 = vld [vmem:[%s1992_s8 + $0x8] sm:$0xff]  ;;  %v449_v53 = vld [vmem:[%s1990_s6 + $0x18] sm:$0xff]  ;;  %v1589_v57 = vpack.c.bf16 %v830_v46, %v829_v45  ;;  %p1656_p0 = scmp.ne.s32.totalorder %s1330_s29, %s1655_s30  ;;  %p1661_p2 = scmp.lt.s32.totalorder %s1655_s30, %s1655_s30 }
   0xb   :  { %1461 = vmatprep.mubr.msk.f32.mxu0 %vm60_vm1, %v1342_v16  ;;  %v446_v43 = vld [vmem:[%s1990_s6] sm:$0xff]  ;;  %v1585_v48 = vpack.c.bf16 %v828_v41, %v827_v40  ;;  %v448_v54 = vld [vmem:[%s1990_s6 + $0x10] sm:$0xff]  ;;  %v1376_v61 = vld [vmem:[%s1988_s4 + $0x28] sm:$0xff] }
   0xc   :  { %1569 = vmatprep.subr.msk.bf16.mxu0 %vm1754_vm4, %v1567_v13  ;;  %v478_v56 = vld [vmem:[%s1992_s8 + $0x10] sm:$0xff]  ;;  %v1375_v60 = vld [vmem:[%s1988_s4 + $0x20] sm:$0xff]  ;;  %v451_v2 = vld [vmem:[%s1990_s6 + $0x28] sm:$0xff]  ;;  %p1662_p3 = por %p1661_p2, %p1660_p1 }
   0xd   :  { %1572 = vmatpush3.bf16.xpose.msk.msra.mxu0 %vm1754_vm4, %v1567_v13  ;;  %v479_v3 = vld [vmem:[%s1992_s8 + $0x18] sm:$0xff]  ;;  %v450_v4 = vld [vmem:[%s1990_s6 + $0x20] sm:$0xff]  ;;  %v1593_v6 = vpack.c.bf16 %v1376_v61, %v1375_v60  ;;  %v481_v13 = vld [vmem:[%s1992_s8 + $0x28] sm:$0xff] }
   0xe   :  { %v480_v5 = vld [vmem:[%s1992_s8 + $0x20] sm:$0xff]  ;;  %v1377_v15 = vld [vmem:[%s1988_s4 + $0x30] sm:$0xff]  ;;  %v1378_v16 = vld [vmem:[%s1988_s4 + $0x38] sm:$0xff]  ;;  %p1663_p4 = pnand %p1662_p3, %p1656_p0 }
   0xf   :  { %v1597_v18 = vpack.c.bf16 %v1378_v16, %v1377_v15 }
  0x14   :  { %1462 = vmatmul.mubr.msk.f32.vlgmr.msra.gmra.mrb[0].mxu0 %vm60_vm1, %v1343_v17 }
  0x15   :  { %1480 = vmatprep.mubr.msk.f32.mxu0 %vm332_vm8, %v326_v19 }
  0xd7   :  { %v1468_v21 = vpop.f32.mrb[0].mxu1 }
  0xd8   :  { %v237_v22 = vadd.f32 %v1468_v21, %v1348_v20  ;;  %v231_v23 = vpop.f32.mrb[1].mxu1 }
  0xd9   :  { %v232_v24 = vadd.f32 %v1348_v20, %v231_v23  ;;  %v1386_v20 = vld [vmem:[%s1988_s4 + $0x48] sm:$0xff]  ;;  %v1388_v23 = vld [vmem:[%s1988_s4 + $0x58] sm:$0xff] }
  0xda   :  { %vm241_vm9 = vcmp.ge.f32.partialorder %v237_v22, 0.0  ;;  %v243_v25 = vmul.f32 0.01, %v237_v22 }
  0xdb   :  { %vm240_vm10 = vcmp.ge.f32.partialorder %v232_v24, 0.0  ;;  %v242_v26 = vmul.f32 0.01, %v232_v24 }
  0xdc   :  { %v1771_v27 = vsel %vm241_vm9, %v237_v22, %v243_v25  ;;  %v1387_v22 = vld [vmem:[%s1988_s4 + $0x50] sm:$0xff] }
  0xdd   :  { %v1773_v28 = vsel %vm240_vm10, %v232_v24, %v242_v26  ;;  %v1613_v24 = vpack.c.bf16 %v1388_v23, %v1387_v22 }
  0xde   :  { %v1574_v29 = vpack.c.bf16 %v1771_v27, %v1773_v28 }
  0xe0   :  { %1576 = vmatpush3.bf16.xpose.msk.msra.mxu1 %vm1754_vm4, %v1574_v29  ;;  %1578 = vmatprep.subr.bf16.mxu0 %v1574_v29 }
  0xe1   :  { %1580 = vmatpush3.bf16.msra.mxu0 %v1574_v29 }
  0xe4   :  { %1481 = vmatmul.mubr.msk.f32.vlgmr.msra.gmra.mrb[2].mxu0 %vm332_vm8, %v327_v30 }
  0xe5   :  { %1483 = vmatprep.mubr.msk.f32.mxu0 %vm332_vm8, %v328_v31 }
  0xe7   :  { %1474 = vmatmul.mubr.msk.f32.vlgmr.msra.gmra.mrb[2].mxu1 %vm60_vm1, %v246_v32  ;;  %v1463_v36 = vpop.f32.mrb[0].mxu0 }
  0xe8   :  { %1484 = vmatmul.mubr.msk.f32.gmra.mrb[4].mxu0 %vm332_vm8, %v329_v33  ;;  %v139_v37 = vpop.f32.mrb[1].mxu0  ;;  %1491 = vmatprep.mubr.msk.f32.mxu1 %vm482_vm11, %v476_v39 }
  0xe9   :  { %1486 = vmatprep.mubr.msk.f32.mxu0 %vm332_vm8, %v330_v34  ;;  %v1581_v38 = vpack.c.bf16 %v1463_v36, %v139_v37 }
  0xeb   :  { %1582 = vmatprep.subr.bf16.mxu0 %v1581_v38 }
  0xec   :  { %1487 = vmatmul.mubr.msk.f32.gmra.mrb[6].mxu0 %vm332_vm8, %v331_v35 }
  0xed   :  { %1504 = vmatprep.mubr.msk.f32.mxu0 %vm332_vm8, %v326_v19  ;;  %1584 = vmatpush3.bf16.msra.mxu0 %v1581_v38  ;;  %v1385_v19 = vld [vmem:[%s1988_s4 + $0x40] sm:$0xff] }
  0xee   :  { %v1609_v21 = vpack.c.bf16 %v1386_v20, %v1385_v19 }
  0xf0   :  { %1505 = vmatmul.mubr.msk.f32.vlgmr.msra.gmra.mrb[8].mxu0 %vm332_vm8, %v327_v30 }
  0xf1   :  { %1507 = vmatprep.mubr.msk.f32.mxu0 %vm332_vm8, %v328_v31 }
  0xf4   :  { %1508 = vmatmul.mubr.msk.f32.gmra.mrb[10].mxu0 %vm332_vm8, %v329_v33 }
  0xf5   :  { %1510 = vmatprep.mubr.msk.f32.mxu0 %vm332_vm8, %v330_v34 }
  0xf8   :  { %1511 = vmatmul.mubr.msk.f32.gmra.mrb[12].mxu0 %vm332_vm8, %v331_v35 }
 0x1b7   :  { %v1482_v44 = vpop.f32.mrb[2].mxu0 }
 0x1b8   :  { %v417_v47 = vpop.f32.mrb[3].mxu0  ;;  %v453_v49 = vmul.f32 %v1482_v44, %v447_v42 }
 0x1b9   :  { %v452_v50 = vmul.f32 %v446_v43, %v417_v47 }
 0x1ba   :  { %v322_v51 = vpop.f32.mrb[2].mxu1  ;;  %v461_v1 = vsel %vm60_vm1, %v453_v49, 0.0 }
 0x1bb   :  { %v1475_v55 = vpop.f32.mrb[3].mxu1  ;;  %1489 = vmatprep.subr.msk.mxu1 %vm501_vm12, %v322_v51  ;;  %v1485_v58 = vpop.f32.mrb[4].mxu0  ;;  %v458_v59 = vsel %vm60_vm1, %v452_v50, 0.0 }
 0x1bc   :  { %1490 = vmatpush3.msk.msra.mxu1 %vm501_vm12, %v322_v51  ;;  %459 = vadd.xlane.f32.xlu1 %v458_v59  ;;  %v427_v62 = vpop.f32.mrb[5].mxu0  ;;  %v455_v63 = vmul.f32 %v1485_v58, %v449_v53 }
 0x1bd   :  { %1492 = vmatmul.mubr.msk.f32.vlgmr.msra.gmra.mrb[4].mxu1 %vm482_vm11, %v477_v52  ;;  %1586 = vmatprep.subr.bf16.mxu1 %v1585_v48  ;;  %v454_v0 = vmul.f32 %v448_v54, %v427_v62 }
 0x1be   :  { %1494 = vmatprep.mubr.msk.f32.mxu1 %vm482_vm11, %v478_v56  ;;  %1588 = vmatpush3.bf16.msra.mxu1 %v1585_v48  ;;  %v467_v11 = vsel %vm60_vm1, %v455_v63, 0.0 }
 0x1bf   :  { %1590 = vmatprep.subr.bf16.mxu1 %v1589_v57  ;;  %v464_v7 = vsel %vm60_vm1, %v454_v0, 0.0  ;;  %v1488_v8 = vpop.f32.mrb[6].mxu0 }
 0x1c0   :  { %462 = vadd.xlane.f32.xlu1 %v461_v1  ;;  %465 = vadd.xlane.f32.xlu0 %v464_v7  ;;  %v457_v9 = vmul.f32 %v1488_v8, %v451_v2  ;;  %v437_v10 = vpop.f32.mrb[7].mxu0 }
 0x1c1   :  { %1495 = vmatmul.mubr.msk.f32.gmra.mrb[6].mxu1 %vm482_vm11, %v479_v3  ;;  %v456_v12 = vmul.f32 %v450_v4, %v437_v10 }
 0x1c2   :  { %1497 = vmatprep.mubr.msk.f32.mxu1 %vm482_vm11, %v480_v5  ;;  %1592 = vmatpush3.bf16.msra.mxu1 %v1589_v57  ;;  %v473_v14 = vsel %vm60_vm1, %v457_v9, 0.0 }
 0x1c3   :  { %1594 = vmatprep.subr.bf16.mxu1 %v1593_v6  ;;  %v470_v17 = vsel %vm60_vm1, %v456_v12, 0.0  ;;  %v1907_v25 = vpop.f32.mrb[8].mxu0 }
 0x1c4   :  { %468 = vadd.xlane.f32.xlu0 %v467_v11  ;;  %474 = vadd.xlane.f32.xlu1 %v473_v14  ;;  %v1909_v26 = vpop.f32.mrb[9].mxu0  ;;  %vm720_vm14 = vcmp.gt.f32.partialorder %v1907_v25, 0.0 }
 0x1c5   :  { %1498 = vmatmul.mubr.msk.f32.gmra.mrb[8].mxu1 %vm482_vm11, %v481_v13  ;;  %vm719_vm3 = vcmp.gt.f32.partialorder %v1909_v26, 0.0 }
 0x1c6   :  { %1521 = vmatprep.mubr.msk.f32.mxu1 %vm60_vm1, %v1773_v28 }
 0x1c7   :  { %v1911_v29 = vpop.f32.mrb[10].mxu0 }
 0x1c8   :  { %471 = vadd.xlane.f32.xlu0 %v470_v17  ;;  %v1913_v30 = vpop.f32.mrb[11].mxu0  ;;  %vm722_vm15 = vcmp.gt.f32.partialorder %v1911_v29, 0.0 }
 0x1c9   :  { %1522 = vmatmul.mubr.msk.f32.vlgmr.msra.gmra.mrb[10].mxu1 %vm60_vm1, %v1771_v27  ;;  %vm721_vm4 = vcmp.gt.f32.partialorder %v1913_v30, 0.0 }
 0x1ca   :  { %1596 = vmatpush3.bf16.msra.mxu1 %v1593_v6  ;;  %1532 = vmatprep.mubr.msk.f32.mxu1 %vm60_vm1, %v1773_v28 }
 0x1cb   :  { %1598 = vmatprep.subr.bf16.mxu1 %v1597_v18  ;;  %v1915_v31 = vpop.f32.mrb[12].mxu0 }
 0x1cc   :  { %v1917_v32 = vpop.f32.mrb[13].mxu0  ;;  %vm724_vm6 = vcmp.gt.f32.partialorder %v1915_v31, 0.0 }
 0x1cd   :  { %vm723_vm9 = vcmp.gt.f32.partialorder %v1917_v32, 0.0 }
 0x1ce   :  { %1600 = vmatpush3.bf16.msra.mxu1 %v1597_v18 }
 0x1cf   :  { %1610 = vmatprep.subr.bf16.mxu1 %v1609_v21 }
 0x1d1   :  { %1533 = vmatmul.mubr.msk.f32.vlgmr.msra.gmra.mrb[12].mxu1 %vm60_vm1, %v1771_v27 }
 0x1d2   :  { %1612 = vmatpush3.bf16.msra.mxu1 %v1609_v21  ;;  %1557 = vmatprep.mubr.msk.f32.mxu1 %vm60_vm1, %v1773_v28 }
 0x1d3   :  { %1614 = vmatprep.subr.bf16.mxu1 %v1613_v24 }
 0x1d6   :  { %1616 = vmatpush3.bf16.msra.mxu1 %v1613_v24 }
 0x1d9   :  { %1558 = vmatmul.mubr.msk.f32.vlgmr.msra.gmra.mrb[14].mxu1 %vm60_vm1, %v1771_v27 }
 0x249   :  { %v460_v33 = vpop.xlane.xlu1 %459 }
 0x24d   :  { %v466_v34 = vpop.xlane.xlu0 %465  ;;  %v463_v35 = vpop.xlane.xlu1 %462 }
 0x251   :  { %v469_v39 = vpop.xlane.xlu0 %468  ;;  %v475_v45 = vpop.xlane.xlu1 %474 }
 0x255   :  { %v472_v48 = vpop.xlane.xlu0 %471 }
 0x290   :  { %v1493_v28 = vpop.f32.mrb[4].mxu1 }
 0x291   :  { %v601_v36 = vadd.f32 %v1493_v28, %v463_v35  ;;  %v571_v37 = vpop.f32.mrb[5].mxu1 }
 0x292   :  { %v600_v38 = vadd.f32 %v571_v37, %v460_v33 }
 0x293   :  { %v613_v27 = vmul.f32 0.2, %v601_v36  ;;  %vm607_vm13 = vcmp.ge.f32.partialorder %v601_v36, 0.0 }
 0x294   :  { %v1496_v40 = vpop.f32.mrb[6].mxu1  ;;  %v612_v43 = vmul.f32 0.2, %v600_v38  ;;  %vm606_vm2 = vcmp.ge.f32.partialorder %v600_v38, 0.0 }
 0x295   :  { %v603_v41 = vadd.f32 %v1496_v40, %v469_v39  ;;  %v581_v42 = vpop.f32.mrb[7].mxu1  ;;  %v1920_v46 = vsel %vm607_vm13, %v601_v36, %v613_v27 }
 0x296   :  { %v602_v44 = vadd.f32 %v581_v42, %v466_v34  ;;  %v726_v54 = vsel %vm720_vm14, %v1920_v46, -1e+30  ;;  %v618_v58 = vsel %vm606_vm2, %v600_v38, %v612_v43 }
 0x297   :  { %v615_v47 = vmul.f32 0.2, %v603_v41  ;;  %vm609_vm0 = vcmp.ge.f32.partialorder %v603_v41, 0.0  ;;  %v725_v2 = vsel %vm719_vm3, %v618_v58, -1e+30  ;;  %v734_v7 = vsel %vm332_vm8, %v726_v54, -inf }
 0x298   :  { %v614_v49 = vmul.f32 0.2, %v602_v44  ;;  %v1499_v50 = vpop.f32.mrb[8].mxu1  ;;  %vm608_vm5 = vcmp.ge.f32.partialorder %v602_v44, 0.0  ;;  %v731_v9 = vsel %vm332_vm8, %v725_v2, -inf }
 0x299   :  { %v591_v51 = vpop.f32.mrb[9].mxu1  ;;  %v605_v52 = vadd.f32 %v1499_v50, %v475_v45  ;;  %v621_v53 = vsel %vm609_vm0, %v603_v41, %v615_v47 }
 0x29a   :  { %v728_v55 = vsel %vm722_vm15, %v621_v53, -1e+30  ;;  %v620_v56 = vsel %vm608_vm5, %v602_v44, %v614_v49  ;;  %v604_v57 = vadd.f32 %v591_v51, %v472_v48 }
 0x29b   :  { %v617_v59 = vmul.f32 0.2, %v605_v52  ;;  %v740_v60 = vsel %vm332_vm8, %v728_v55, -inf  ;;  %v727_v61 = vsel %vm721_vm4, %v620_v56, -1e+30  ;;  %vm611_vm7 = vcmp.ge.f32.partialorder %v605_v52, 0.0 }
 0x29c   :  { %v1523_v62 = vpop.f32.mrb[10].mxu1  ;;  %741 = vmax.xlane.f32.xlu1 %v740_v60  ;;  %v737_v63 = vsel %vm332_vm8, %v727_v61, -inf  ;;  %v616_v0 = vmul.f32 0.2, %v604_v57  ;;  %vm610_vm10 = vcmp.ge.f32.partialorder %v604_v57, 0.0 }
 0x29d   :  { %v897_v1 = vpop.f32.mrb[11].mxu1  ;;  %738 = vmax.xlane.f32.xlu0 %v737_v63  ;;  %v623_v3 = vsel %vm611_vm7, %v605_v52, %v617_v59 }
 0x29e   :  { %v1934_v4 = vpack.c.bf16 %v1523_v62, %v897_v1  ;;  %v730_v5 = vsel %vm724_vm6, %v623_v3, -1e+30  ;;  %v622_v6 = vsel %vm610_vm10, %v604_v57, %v616_v0 }
 0x29f   :  { %v729_v8 = vsel %vm723_vm9, %v622_v6, -1e+30  ;;  %v746_v10 = vsel %vm332_vm8, %v730_v5, -inf }
 0x2a0   :  { %735 = vmax.xlane.f32.xlu1 %v734_v7  ;;  %v743_v11 = vsel %vm332_vm8, %v729_v8, -inf }
 0x2a1   :  { %732 = vmax.xlane.f32.xlu0 %v731_v9 }
 0x2a4   :  { %v1534_v12 = vpop.f32.mrb[12].mxu1  ;;  %747 = vmax.xlane.f32.xlu1 %v746_v10 }
 0x2a5   :  { %v977_v13 = vpop.f32.mrb[13].mxu1  ;;  %744 = vmax.xlane.f32.xlu0 %v743_v11 }
 0x2a6   :  { %v1601_v14 = vpack.c.bf16 %v1534_v12, %v977_v13 }
 0x2a8   :  { %1602 = vmatprep.subr.bf16.mxu0 %v1601_v14 }
 0x2a9   :  { %1604 = vmatpush3.bf16.msra.mxu0 %v1601_v14 }
 0x2aa   :  { %1606 = vmatprep.subr.bf16.mxu0 %v1934_v4 }
 0x2ac   :  { %v1559_v15 = vpop.f32.mrb[14].mxu1 }
 0x2ad   :  { %v1219_v16 = vpop.f32.mrb[15].mxu1 }
 0x2ae   :  { %v1943_v17 = vpack.c.bf16 %v1559_v15, %v1219_v16 }
 0x329   :  { %v742_v18 = vpop.xlane.xlu1 %741 }
 0x32a   :  { %vm752_vm11 = vcmp.gt.f32.partialorder %v742_v18, -5e+29  ;;  %v739_v19 = vpop.xlane.xlu0 %738 }
 0x32b   :  { %v758_v20 = vsel %vm752_vm11, %v742_v18, 0.0  ;;  %vm751_vm12 = vcmp.gt.f32.partialorder %v739_v19, -5e+29 }
 0x32c   :  { %v764_v21 = vsub.f32 %v621_v53, %v758_v20  ;;  %v757_v22 = vsel %vm751_vm12, %v739_v19, 0.0 }
 0x32d   :  { %v763_v23 = vsub.f32 %v620_v56, %v757_v22  ;;  %v736_v24 = vpop.xlane.xlu1 %735  ;;  %v1393_v22 = vld [vmem:[%s1993_s9] ss:$0 sm:$0xff] }
 0x32e   :  { %v773_v33 = vmul.f32 1.442695, %v764_v21  ;;  %vm750_vm13 = vcmp.gt.f32.partialorder %v736_v24, -5e+29  ;;  %v733_v34 = vpop.xlane.xlu0 %732 }
 0x32f   :  { %v771_v28 = vmul.f32 1.442695, %v763_v23  ;;  %v756_v35 = vsel %vm750_vm13, %v736_v24, 0.0  ;;  %vm749_vm14 = vcmp.gt.f32.partialorder %v733_v34, -5e+29 }
 0x330   :  { %1631 = vpow2.f32 %v773_v33  ;;  %v762_v36 = vsub.f32 %v1920_v46, %v756_v35  ;;  %v755_v37 = vsel %vm749_vm14, %v733_v34, 0.0 }
 0x331   :  { %1633 = vpow2.f32 %v771_v28  ;;  %v761_v38 = vsub.f32 %v618_v58, %v755_v37  ;;  %v748_v27 = vpop.xlane.xlu1 %747 }
 0x332   :  { %v769_v39 = vmul.f32 1.442695, %v762_v36  ;;  %vm754_vm15 = vcmp.gt.f32.partialorder %v748_v27, -5e+29  ;;  %v745_v40 = vpop.xlane.xlu0 %744 }
 0x333   :  { %v767_v41 = vmul.f32 1.442695, %v761_v38  ;;  %v760_v42 = vsel %vm754_vm15, %v748_v27, 0.0  ;;  %vm753_vm0 = vcmp.gt.f32.partialorder %v745_v40, -5e+29 }
 0x334   :  { %1635 = vpow2.f32 %v769_v39  ;;  %v766_v43 = vsub.f32 %v623_v3, %v760_v42  ;;  %v759_v44 = vsel %vm753_vm0, %v745_v40, 0.0 }
 0x335   :  { %1637 = vpow2.f32 %v767_v41  ;;  %v765_v45 = vsub.f32 %v622_v6, %v759_v44 }
 0x336   :  { %v777_v47 = vmul.f32 1.442695, %v766_v43 }
 0x337   :  { %v775_v48 = vmul.f32 1.442695, %v765_v45 }
 0x338   :  { %1639 = vpow2.f32 %v777_v47 }
 0x339   :  { %1641 = vpow2.f32 %v775_v48 }
 0x33a   :  { %v1632_v46 = vpop.eup %1631 }
 0x33b   :  { %v1634_v49 = vpop.eup %1633  ;;  %v782_v50 = vmul.f32 %v1632_v46, %v1911_v29 }
 0x33c   :  { %v781_v51 = vmul.f32 %v1634_v49, %v1913_v30 }
 0x33d   :  { %v794_v52 = vsel %vm332_vm8, %v782_v50, 0.0 }
 0x33e   :  { %v1636_v53 = vpop.eup %1635  ;;  %795 = vadd.xlane.f32.xlu1 %v794_v52  ;;  %v791_v54 = vsel %vm332_vm8, %v781_v51, 0.0 }
 0x33f   :  { %v1638_v55 = vpop.eup %1637  ;;  %792 = vadd.xlane.f32.xlu0 %v791_v54  ;;  %v780_v56 = vmul.f32 %v1636_v53, %v1907_v25 }
 0x340   :  { %v779_v57 = vmul.f32 %v1638_v55, %v1909_v26 }
 0x341   :  { %v788_v58 = vsel %vm332_vm8, %v780_v56, 0.0 }
 0x342   :  { %v1640_v59 = vpop.eup %1639  ;;  %789 = vadd.xlane.f32.xlu1 %v788_v58  ;;  %v785_v29 = vsel %vm332_vm8, %v779_v57, 0.0 }
 0x343   :  { %v1642_v60 = vpop.eup %1641  ;;  %786 = vadd.xlane.f32.xlu0 %v785_v29  ;;  %v784_v30 = vmul.f32 %v1640_v59, %v1915_v31 }
 0x344   :  { %v783_v61 = vmul.f32 %v1642_v60, %v1917_v32 }
 0x345   :  { %v800_v62 = vsel %vm332_vm8, %v784_v30, 0.0 }
 0x346   :  { %801 = vadd.xlane.f32.xlu1 %v800_v62  ;;  %v797_v63 = vsel %vm332_vm8, %v783_v61, 0.0 }
 0x347   :  { %798 = vadd.xlane.f32.xlu0 %v797_v63 }
 0x3cb   :  { %v796_v25 = vpop.xlane.xlu1 %795 }
 0x3cc   :  { %vm806_vm2 = vcmp.gt.f32.partialorder %v796_v25, 0.0  ;;  %v793_v26 = vpop.xlane.xlu0 %792 }
 0x3cd   :  { %v812_v0 = vsel %vm806_vm2, %v796_v25, 1.0  ;;  %vm805_vm3 = vcmp.gt.f32.partialorder %v793_v26, 0.0 }
 0x3ce   :  { %1643 = vrcp.f32 %v812_v0  ;;  %v811_v1 = vsel %vm805_vm3, %v793_v26, 1.0 }
 0x3cf   :  { %1645 = vrcp.f32 %v811_v1  ;;  %v790_v2 = vpop.xlane.xlu1 %789 }
 0x3d0   :  { %vm804_vm4 = vcmp.gt.f32.partialorder %v790_v2, 0.0  ;;  %v787_v3 = vpop.xlane.xlu0 %786 }
 0x3d1   :  { %vm803_vm5 = vcmp.gt.f32.partialorder %v787_v3, 0.0  ;;  %v810_v32 = vsel %vm804_vm4, %v790_v2, 1.0 }
 0x3d2   :  { %v809_v31 = vsel %vm803_vm5, %v787_v3, 1.0 }
 0x3d3   :  { %1647 = vrcp.f32 %v809_v31  ;;  %v802_v6 = vpop.xlane.xlu1 %801 }
 0x3d4   :  { %v799_v5 = vpop.xlane.xlu0 %798  ;;  %1649 = vrcp.f32 %v810_v32  ;;  %vm808_vm7 = vcmp.gt.f32.partialorder %v802_v6, 0.0 }
 0x3d5   :  { %vm807_vm6 = vcmp.gt.f32.partialorder %v799_v5, 0.0  ;;  %v814_v12 = vsel %vm808_vm7, %v802_v6, 1.0 }
 0x3d6   :  { %v813_v7 = vsel %vm807_vm6, %v799_v5, 1.0 }
 0x3d7   :  { %1651 = vrcp.f32 %v813_v7 }
 0x3d8   :  { %v1644_v8 = vpop.eup %1643  ;;  %1653 = vrcp.f32 %v814_v12 }
 0x3d9   :  { %v1646_v9 = vpop.eup %1645  ;;  %v824_v11 = vmul.f32 %v1644_v8, %v782_v50 }
 0x3da   :  { %v823_v10 = vmul.f32 %v1646_v9, %v781_v51 }
 0x3dc   :  { %1539 = vmatprep.mubr.msk.f32.mxu0 %vm332_vm8, %v823_v10 }
 0x3dd   :  { %v1648_v13 = vpop.eup %1647  ;;  %1540 = vmatmul.mubr.msk.f32.vlgmr.msra.gmra.mrb[14].mxu0 %vm332_vm8, %v824_v11 }
 0x3de   :  { %1608 = vmatpush3.bf16.msra.mxu0 %v1934_v4  ;;  %v821_v14 = vmul.f32 %v1648_v13, %v779_v57  ;;  %v1650_v15 = vpop.eup %1649 }
 0x3df   :  { %1618 = vmatprep.subr.bf16.mxu0 %v1943_v17  ;;  %v822_v18 = vmul.f32 %v1650_v15, %v780_v56 }
 0x3e0   :  { %1546 = vmatprep.mubr.msk.f32.mxu0 %vm332_vm8, %v821_v14 }
 0x3e1   :  { %v1652_v16 = vpop.eup %1651 }
 0x3e2   :  { %v825_v19 = vmul.f32 %v1652_v16, %v783_v61  ;;  %v1654_v20 = vpop.eup %1653 }
 0x3e3   :  { %v826_v21 = vmul.f32 %v1654_v20, %v784_v30 }
 0x3e5   :  { %1547 = vmatmul.mubr.msk.f32.vlgmr.msra.gmra.mrb[14].mxu0 %vm332_vm8, %v822_v18 }
 0x3e6   :  { %1620 = vmatpush3.bf16.msra.mxu0 %v1943_v17  ;;  %1564 = vmatprep.mubr.msk.f32.mxu0 %vm332_vm8, %v825_v19 }
 0x3ed   :  { %1565 = vmatmul.mubr.msk.f32.vlgmr.msra.gmra.mrb[14].mxu0 %vm332_vm8, %v826_v21 }
 0x4c0   :  { %v1566_v4 = vpop.f32.mrb[14].mxu0 }
 0x4c1   :  { %v1312_v23 = vmul.f32 0.33333334, %v1566_v4  ;;  %v1300_v24 = vpop.f32.mrb[15].mxu0 }
 0x4c2   :  { %v1311_v33 = vmul.f32 0.33333334, %v1300_v24 }
 0x4c3   :  { %v1321_v34 = vadd.f32 %v1393_v22, %v1312_v23 }
 0x4c4   :  { %v1320_v28 = vadd.f32 %v1393_v22, %v1311_v33 }
 0x4c5   :  { %1323 = vst.msk [vmem:[#allocation2 + $0x8] sm:$0xff] %vm60_vm1, %v1321_v34 }
 0x4c6   :  { %1322 = vst.msk [vmem:[#allocation2] sm:$0xff] %vm60_vm1, %v1320_v28 }
 0x4c7   :  { %1666 = shalt.err (!%p1663_p4)
}
 0x4c8   :  { %s1667_s5 = scalar_lea.hbm %s1994_s10, 256 }
 0x4c9   :  { %p1668_p5 = scmp.ne.s32.totalorder %s1994_s10, %s1667_s5  ;;  %p1671_p6 = scmp.lt.u32.totalorder %s1667_s5, %s1994_s10 }
 0x4cb   :  { %p1673_p7 = pnand %p1671_p6, %p1668_p5 }
 0x4cd   :  { %1676 = shalt.err (!%p1673_p7)
}
 0x4ce   :  { %s1683_s15 = smov 128   ;;  %s1684_s16 = smov 8  }
 0x4cf   :  { %1335 = dma.vmem_to_hbm [thread:$0]  %s1330_s29, 256, %s1994_s10, [#allocation3], %s1683_s15, %s1683_s15, %s1684_s16  }
 0x4d0   :  { %1677 = dma.done.wait [#allocation3], 256  }
 0x4d1   :  { %1678 = vsyncadd [#allocation3], 4294967040 }
 0x4d2   :  { %1339 = vsyncpa [#allocation3], 1 }

</bundles_post_ra>
